<compile_context>
chip_gen: v6e
topology: v6e:2x2x1
jax: 0.10.0
libtpu: 0.0.40
codegen_flags: <defaults>
</compile_context>

<pallas_src>
import functools

import jax
import jax.numpy as jnp
from jax.experimental import pallas as pl
from jax.experimental.pallas import tpu as pltpu


def _round_up(n, m):
    return ((n + m - 1) // m) * m


def fn_net_kernel(x_ref, w0_ref, w1_ref, w2_ref, b_ref, o_ref, *, hid_pad, out_pad):
    # b_ref is the stacked-bias tile (3, C): rows 0/1 hold b0/b1 in the first hid_pad lanes,
    # row 2 holds b2 in the first out_pad lanes.
    x = x_ref[...]
    # Layer 1: tanh(x @ W0 + b0)
    h = jnp.tanh(
        jnp.dot(x, w0_ref[...], preferred_element_type=jnp.float32)
        + b_ref[0:1, :hid_pad]
    )
    # Layer 2: tanh(h @ W1 + b1)
    h = jnp.tanh(
        jnp.dot(h, w1_ref[...], preferred_element_type=jnp.float32)
        + b_ref[1:2, :hid_pad]
    )
    # Output layer (no activation); padded output lanes carry zeros and are sliced off outside.
    out = (
        jnp.dot(h, w2_ref[...], preferred_element_type=jnp.float32)
        + b_ref[2:3, :out_pad]
    )
    o_ref[...] = out.astype(o_ref.dtype)


def fn_net_forward(x, w0, b0, w1, b1, w2, b2, *, block_b=256):
    """y = (tanh(tanh(x @ w0 + b0) @ w1 + b1)) @ w2 + b2  (weights stored (in, out))."""
    B, in_dim = x.shape
    hid = w0.shape[1]
    out_dim = w2.shape[1]
    dtype = x.dtype

    # Lane-dense padding of feature dims (exact: zero padding, sliced off at the end).
    hid_pad = _round_up(hid, 128)
    out_pad = _round_up(out_dim, 128)
    bias_cols = max(hid_pad, out_pad)

    # Batch tiling: TB multiple of 8 (f32 sublane), 256 default for large batches.
    tb = min(block_b, _round_up(B, 8))
    b_pad = _round_up(B, tb)

    # Zero-pad parameters once in the wrapper (keeps semantics exact).
    w0p = jnp.zeros((in_dim, hid_pad), dtype).at[:, :hid].set(w0)
    w1p = jnp.zeros((hid_pad, hid_pad), dtype).at[:hid, :hid].set(w1)
    w2p = jnp.zeros((hid_pad, out_pad), dtype).at[:hid, :out_dim].set(w2)
    bstack = jnp.zeros((3, bias_cols), dtype)
    bstack = bstack.at[0, :hid].set(b0.reshape(-1))
    bstack = bstack.at[1, :hid].set(b1.reshape(-1))
    bstack = bstack.at[2, :out_dim].set(b2.reshape(-1))

    xp = x if b_pad == B else jnp.zeros((b_pad, in_dim), dtype).at[:B].set(x)

    kernel = functools.partial(fn_net_kernel, hid_pad=hid_pad, out_pad=out_pad)

    # Weights / biases: same block every grid step -> stay VMEM-resident.
    const_map = lambda i: (0, 0)

    out_padded = pl.pallas_call(
        kernel,
        out_shape=jax.ShapeDtypeStruct((b_pad, out_pad), dtype),
        grid=(b_pad // tb,),
        in_specs=[
            pl.BlockSpec((tb, in_dim), lambda i: (i, 0)),        # x: tiled over batch
            pl.BlockSpec((in_dim, hid_pad), const_map),          # W0 (resident)
            pl.BlockSpec((hid_pad, hid_pad), const_map),         # W1 (resident)
            pl.BlockSpec((hid_pad, out_pad), const_map),         # W2 (resident)
            pl.BlockSpec((3, bias_cols), const_map),             # stacked biases (resident)
        ],
        out_specs=pl.BlockSpec((tb, out_pad), lambda i: (i, 0)),
        compiler_params=pltpu.CompilerParams(
            dimension_semantics=("parallel",),                   # megacore-shardable batch axis
        ),
    )(xp, w0p, w1p, w2p, bstack)

    return out_padded[:B, :out_dim]


def _reference(x, w0, b0, w1, b1, w2, b2):
    h = jnp.tanh(x @ w0 + b0)
    h = jnp.tanh(h @ w1 + b1)
    return h @ w2 + b2


if __name__ == "__main__":
    # Small shapes consistent with FN_Net(input_dim, output_dim, hid_size)
    input_dim = 4
    output_dim = 2
    hid_size = 32

    key = jax.random.PRNGKey(0)
    kx, kx2, k0, kb0, k1, kb1, k2, kb2 = jax.random.split(key, 8)

    # Deterministic parameter init (PyTorch-style uniform(-1/sqrt(fan_in), 1/sqrt(fan_in)))
    def init_linear(kw, kb, fan_in, fan_out):
        bound = 1.0 / jnp.sqrt(fan_in)
        W = jax.random.uniform(kw, (fan_in, fan_out), jnp.float32, -bound, bound)
        b = jax.random.uniform(kb, (1, fan_out), jnp.float32, -bound, bound)
        return W, b

    w0, b0 = init_linear(k0, kb0, input_dim, hid_size)
    w1, b1 = init_linear(k1, kb1, hid_size, hid_size)
    w2, b2 = init_linear(k2, kb2, hid_size, output_dim)

    # Case 1: small batch (single grid step).
    x_small = jax.random.normal(kx, (8, input_dim), jnp.float32)
    out_small = jax.block_until_ready(fn_net_forward(x_small, w0, b0, w1, b1, w2, b2))
    ref_small = _reference(x_small, w0, b0, w1, b1, w2, b2)
    assert out_small.shape == (8, output_dim)
    assert jnp.allclose(out_small, ref_small, atol=1e-5, rtol=1e-5)

    # Case 2: larger, non-multiple batch (exercises batch tiling + padding path).
    x_big = jax.random.normal(kx2, (500, input_dim), jnp.float32)
    out_big = jax.block_until_ready(fn_net_forward(x_big, w0, b0, w1, b1, w2, b2))
    ref_big = _reference(x_big, w0, b0, w1, b1, w2, b2)
    assert out_big.shape == (500, output_dim)
    assert jnp.allclose(out_big, ref_big, atol=1e-5, rtol=1e-5)

    print("KERNEL_OK")
</pallas_src>

<mosaic_0001>
module attributes {stable_mosaic.version = 11 : i64} {
  func.func @fn_net_kernel(%arg0: i32, %arg1: memref<8x4xf32, #tpu.memory_space<vmem>>, %arg2: memref<4x128xf32, #tpu.memory_space<vmem>>, %arg3: memref<128x128xf32, #tpu.memory_space<vmem>>, %arg4: memref<128x128xf32, #tpu.memory_space<vmem>>, %arg5: memref<3x128xf32, #tpu.memory_space<vmem>>, %arg6: memref<8x128xf32, #tpu.memory_space<vmem>>) attributes {dimension_semantics = [#tpu.dimension_semantics<parallel>], iteration_bounds = array<i64: 1>, scalar_prefetch = 0 : i64, scratch_operands = 0 : i64, tpu.core_type = #tpu.core_type<tc>, window_params = [{transform_indices = @transform_0, window_bounds = array<i64: 8, 4>}, {pipeline_mode = #tpu.pipeline_mode<synchronous>, transform_indices = @transform_1, window_bounds = array<i64: 4, 128>}, {pipeline_mode = #tpu.pipeline_mode<synchronous>, transform_indices = @transform_2, window_bounds = array<i64: 128, 128>}, {pipeline_mode = #tpu.pipeline_mode<synchronous>, transform_indices = @transform_3, window_bounds = array<i64: 128, 128>}, {pipeline_mode = #tpu.pipeline_mode<synchronous>, transform_indices = @transform_4, window_bounds = array<i64: 3, 128>}, {transform_indices = @transform_5, window_bounds = array<i64: 8, 128>}]} {
    %c0 = arith.constant 0 : index
    %c0_0 = arith.constant 0 : index
    %0 = vector.load %arg1[%c0, %c0_0] : memref<8x4xf32, #tpu.memory_space<vmem>>, vector<8x4xf32>
    %c0_1 = arith.constant 0 : index
    %c0_2 = arith.constant 0 : index
    %1 = vector.load %arg2[%c0_1, %c0_2] : memref<4x128xf32, #tpu.memory_space<vmem>>, vector<4x128xf32>
    %cst = arith.constant dense<0.000000e+00> : vector<8x128xf32>
    %2 = tpu.matmul %0, %1, %cst {dimension_numbers = #tpu.dot_dimension_numbers<[1], [0], [0], [1], [0, 0, 1, 1], [], []>} : vector<8x4xf32>, vector<4x128xf32>, vector<8x128xf32> -> vector<8x128xf32>
    %c0_3 = arith.constant 0 : index
    %c0_4 = arith.constant 0 : index
    %3 = vector.load %arg5[%c0_3, %c0_4] : memref<3x128xf32, #tpu.memory_space<vmem>>, vector<1x128xf32>
    %4 = vector.broadcast %3 : vector<1x128xf32> to vector<8x128xf32>
    %5 = arith.addf %2, %4 : vector<8x128xf32>
    %6 = math.tanh %5 : vector<8x128xf32>
    %c0_5 = arith.constant 0 : index
    %c0_6 = arith.constant 0 : index
    %7 = vector.load %arg3[%c0_5, %c0_6] : memref<128x128xf32, #tpu.memory_space<vmem>>, vector<128x128xf32>
    %cst_7 = arith.constant dense<0.000000e+00> : vector<8x128xf32>
    %8 = tpu.matmul %6, %7, %cst_7 {dimension_numbers = #tpu.dot_dimension_numbers<[1], [0], [0], [1], [0, 0, 1, 1], [], []>} : vector<8x128xf32>, vector<128x128xf32>, vector<8x128xf32> -> vector<8x128xf32>
    %c1 = arith.constant 1 : index
    %c0_8 = arith.constant 0 : index
    %9 = vector.load %arg5[%c1, %c0_8] : memref<3x128xf32, #tpu.memory_space<vmem>>, vector<1x128xf32>
    %10 = vector.broadcast %9 : vector<1x128xf32> to vector<8x128xf32>
    %11 = arith.addf %8, %10 : vector<8x128xf32>
    %12 = math.tanh %11 : vector<8x128xf32>
    %c0_9 = arith.constant 0 : index
    %c0_10 = arith.constant 0 : index
    %13 = vector.load %arg4[%c0_9, %c0_10] : memref<128x128xf32, #tpu.memory_space<vmem>>, vector<128x128xf32>
    %cst_11 = arith.constant dense<0.000000e+00> : vector<8x128xf32>
    %14 = tpu.matmul %12, %13, %cst_11 {dimension_numbers = #tpu.dot_dimension_numbers<[1], [0], [0], [1], [0, 0, 1, 1], [], []>} : vector<8x128xf32>, vector<128x128xf32>, vector<8x128xf32> -> vector<8x128xf32>
    %c2 = arith.constant 2 : index
    %c0_12 = arith.constant 0 : index
    %15 = vector.load %arg5[%c2, %c0_12] : memref<3x128xf32, #tpu.memory_space<vmem>>, vector<1x128xf32>
    %16 = vector.broadcast %15 : vector<1x128xf32> to vector<8x128xf32>
    %17 = arith.addf %14, %16 : vector<8x128xf32>
    %c0_13 = arith.constant 0 : index
    %c0_14 = arith.constant 0 : index
    %18 = vector.load %arg6[%c0_13, %c0_14] : memref<8x128xf32, #tpu.memory_space<vmem>>, vector<8x128xf32>
    tpu.vector_store %arg6[%c0_13, %c0_14], %17 {strides = array<i32>} : memref<8x128xf32, #tpu.memory_space<vmem>>, vector<8x128xf32>,
    return
  }
  func.func @transform_0(%arg0: i32) -> (i32, i32) {
    %c0_i32 = arith.constant 0 : i32
    %c0_i32_0 = arith.constant 0 : i32
    return %arg0, %c0_i32 : i32, i32
  }
  func.func @transform_1(%arg0: i32) -> (i32, i32) {
    %c0_i32 = arith.constant 0 : i32
    %c0_i32_0 = arith.constant 0 : i32
    %c0_i32_1 = arith.constant 0 : i32
    return %c0_i32, %c0_i32_0 : i32, i32
  }
  func.func @transform_2(%arg0: i32) -> (i32, i32) {
    %c0_i32 = arith.constant 0 : i32
    %c0_i32_0 = arith.constant 0 : i32
    %c0_i32_1 = arith.constant 0 : i32
    return %c0_i32, %c0_i32_0 : i32, i32
  }
  func.func @transform_3(%arg0: i32) -> (i32, i32) {
    %c0_i32 = arith.constant 0 : i32
    %c0_i32_0 = arith.constant 0 : i32
    %c0_i32_1 = arith.constant 0 : i32
    return %c0_i32, %c0_i32_0 : i32, i32
  }
  func.func @transform_4(%arg0: i32) -> (i32, i32) {
    %c0_i32 = arith.constant 0 : i32
    %c0_i32_0 = arith.constant 0 : i32
    %c0_i32_1 = arith.constant 0 : i32
    return %c0_i32, %c0_i32_0 : i32, i32
  }
  func.func @transform_5(%arg0: i32) -> (i32, i32) {
    %c0_i32 = arith.constant 0 : i32
    %c0_i32_0 = arith.constant 0 : i32
    return %arg0, %c0_i32 : i32, i32
  }
}

</mosaic_0001>

<bundles_post_ra>
// kernel: tpu_custom_call.1
= control target key start
LH: loop header
LB: loop body
LE: loop exit
PB: predicated region body
PF: predicated region fallthrough
CT: control target
= control target key end

     0   :  { %10 = vsyncpa [#allocation3], 0  ;;  %s628_s0 = inlined_call_operand.vmem [shape: f32[8,4], index: 0, kind: input, shape index: {}]   ;;  %s629_s1 = inlined_call_operand.vmem [shape: f32[4,128], index: 1, kind: input, shape index: {}]   ;;  %s630_s2 = inlined_call_operand.hbm [shape: f32[128,128], index: 2, kind: input, shape index: {}]   ;;  %s631_s3 = inlined_call_operand.hbm [shape: f32[128,128], index: 3, kind: input, shape index: {}]   ;;  %s632_s4 = inlined_call_operand.vmem [shape: f32[3,128], index: 4, kind: input, shape index: {}]   ;;  %s633_s5 = inlined_call_operand.hbm [shape: f32[8,128], index: 5, kind: output, shape index: {}]  }
   0x1   :  { %11 = vsyncpa [#allocation6], 0 }
   0x2   :  { %12 = vsyncpa [#allocation4], 0  ;;  %s528_s18 = smov [#allocation2]  }
   0x3   :  { %s22_s19 = sshll.u32 %s528_s18, 4  ;;  %s23_s19 = int_to_ptr.vmem [resolvable:$true] %s22_s19 }
   0x4   :  { %s470_s20 = scalar_lea.vmem %s23_s19, 2048  ;;  %p475_p1 = scmp.lt.s32.totalorder %s23_s19, %s23_s19 }
   0x5   :  { %p471_p0 = scmp.ne.s32.totalorder %s23_s19, %s470_s20  ;;  %p476_p2 = scmp.lt.s32.totalorder %s470_s20, %s470_s20 }
   0x7   :  { %p477_p3 = por %p476_p2, %p475_p1 }
   0x9   :  { %p478_p4 = pnand %p477_p3, %p471_p0 }
   0xb   :  { %481 = shalt.err (!%p478_p4)
}
   0xc   :  { %s529_s21 = smov 128   ;;  %s530_s22 = smov 8  }
   0xd   :  { %28 = dma.hbm_to_vmem [thread:$0]  %s630_s2, 2048, %s23_s19, [#allocation3], %s529_s21, %s529_s21, %s530_s22  }
   0xe   :  { %s531_s25 = smov [#allocation5]  }
   0xf   :  { %s34_s26 = sshll.u32 %s531_s25, 4  ;;  %s35_s26 = int_to_ptr.vmem [resolvable:$true] %s34_s26 }
  0x10   :  { %s490_s27 = scalar_lea.vmem %s35_s26, 2048  ;;  %p495_p6 = scmp.lt.s32.totalorder %s35_s26, %s35_s26 }
  0x11   :  { %p491_p5 = scmp.ne.s32.totalorder %s35_s26, %s490_s27  ;;  %p496_p7 = scmp.lt.s32.totalorder %s490_s27, %s490_s27 }
  0x13   :  { %p497_p8 = por %p496_p7, %p495_p6 }
  0x15   :  { %p498_p9 = pnand %p497_p8, %p491_p5 }
  0x17   :  { %501 = shalt.err (!%p498_p9)
}
  0x18   :  { %40 = dma.hbm_to_vmem [thread:$0]  %s631_s3, 2048, %s35_s26, [#allocation6], %s529_s21, %s529_s21, %s530_s22  }
  0x19   :  { %522 = dma.done.wait [#allocation3], 2048  }
  0x1a   :  { %523 = vsyncadd [#allocation3], 4294965248 }
  0x1b   :  { %524 = dma.done.wait [#allocation6], 2048  }
  0x1c   :  { %525 = vsyncadd [#allocation6], 4294965248  ;;  %v532_v0 = vmov 0.0   ;;  %vm533_vm0 = vmmov 0   ;;  %vm60_vm1 = vcmask 1043456   ;;  %vm56_vm2 = vcmask 31744  }
  0x1d   :  { %376 = vmatprep.subr.mxu0 %v532_v0  ;;  %378 = vmatprep.mubr.msk.f32.mxu0 %vm533_vm0, %v532_v0  ;;  %v50_v1 = vld [vmem:[%s629_s1] sm:$0xf]  ;;  %v150_v3 = vld [vmem:[#allocation2 + $0x78] sm:$0xff]  ;;  %v149_v4 = vld [vmem:[#allocation2 + $0x70] sm:$0xff]  ;;  %s534_s11 = smov [#allocation7]  }
  0x1e   :  { %381 = vmatprep.subr.mxu1 %v532_v0  ;;  %413 = vmatprep.mubr.msk.f32.mxu1 %vm533_vm0, %v532_v0  ;;  %v49_v2 = vld [vmem:[%s628_s0] sm:$0xff]  ;;  %v148_v5 = vld [vmem:[#allocation2 + $0x68] sm:$0xff]  ;;  %v146_v7 = vld [vmem:[#allocation2 + $0x58] sm:$0xff]  ;;  %s325_s12 = sshll.u32 %s534_s11, 4  ;;  %s326_s12 = int_to_ptr.vmem [resolvable:$true] %s325_s12 }
  0x1f   :  { %377 = vmatpush3.msk.msra.mxu0 %vm60_vm1, %v50_v1  ;;  %382 = vmatpush3.msra.mxu1 %v150_v3  ;;  %v147_v6 = vld [vmem:[#allocation2 + $0x60] sm:$0xff]  ;;  %v145_v8 = vld [vmem:[#allocation2 + $0x50] sm:$0xff]  ;;  %v144_v9 = vld [vmem:[#allocation2 + $0x48] sm:$0xff]  ;;  %s502_s13 = scalar_lea.vmem %s326_s12, 128  ;;  %p507_p11 = scmp.lt.s32.totalorder %s326_s12, %s326_s12 }
  0x20   :  { %379 = vmatmul.mubr.msk.f32.vlgmr.msra.gmra.mxu0 %vm56_vm2, %v49_v2  ;;  %383 = vmatprep.subr.mxu1 %v532_v0  ;;  %v143_v10 = vld [vmem:[#allocation2 + $0x40] sm:$0xff]  ;;  %v142_v11 = vld [vmem:[#allocation2 + $0x38] sm:$0xff]  ;;  %v141_v12 = vld [vmem:[#allocation2 + $0x30] sm:$0xff]  ;;  %p503_p10 = scmp.ne.s32.totalorder %s326_s12, %s502_s13  ;;  %p508_p12 = scmp.lt.s32.totalorder %s502_s13, %s502_s13 }
  0x21   :  { %384 = vmatpush3.msra.mxu1 %v149_v4  ;;  %416 = vmatprep.subr.mxu0 %v532_v0  ;;  %v140_v13 = vld [vmem:[#allocation2 + $0x28] sm:$0xff]  ;;  %v139_v14 = vld [vmem:[#allocation2 + $0x20] sm:$0xff]  ;;  %v138_v15 = vld [vmem:[#allocation2 + $0x18] sm:$0xff] }
  0x22   :  { %385 = vmatprep.subr.mxu1 %v532_v0  ;;  %448 = vmatprep.mubr.msk.f32.mxu0 %vm533_vm0, %v532_v0  ;;  %v137_v16 = vld [vmem:[#allocation2 + $0x10] sm:$0xff]  ;;  %v136_v17 = vld [vmem:[#allocation2 + $0x8] sm:$0xff]  ;;  %v135_v18 = vld [vmem:[#allocation2] sm:$0xff]  ;;  %p509_p13 = por %p508_p12, %p507_p11 }
  0x23   :  { %386 = vmatpush3.msra.mxu1 %v148_v5  ;;  %v242_v19 = vld [vmem:[#allocation5 + $0x78] sm:$0xff]  ;;  %v241_v20 = vld [vmem:[#allocation5 + $0x70] sm:$0xff]  ;;  %v240_v21 = vld [vmem:[#allocation5 + $0x68] sm:$0xff] }
  0x24   :  { %387 = vmatprep.subr.mxu1 %v532_v0  ;;  %417 = vmatpush3.msra.mxu0 %v242_v19  ;;  %v239_v22 = vld [vmem:[#allocation5 + $0x60] sm:$0xff]  ;;  %v238_v23 = vld [vmem:[#allocation5 + $0x58] sm:$0xff]  ;;  %v237_v24 = vld [vmem:[#allocation5 + $0x50] sm:$0xff]  ;;  %p510_p0 = pnand %p509_p13, %p503_p10 }
  0x25   :  { %388 = vmatpush3.msra.mxu1 %v147_v6  ;;  %418 = vmatprep.subr.mxu0 %v532_v0  ;;  %v236_v25 = vld [vmem:[#allocation5 + $0x48] sm:$0xff]  ;;  %v335_v26 = vld [vmem:[%s632_s4] ss:$0 sm:$0xff]  ;;  %v234_v32 = vld [vmem:[#allocation5 + $0x38] sm:$0xff] }
  0x26   :  { %389 = vmatprep.subr.mxu1 %v532_v0  ;;  %419 = vmatpush3.msra.mxu0 %v241_v20  ;;  %v235_v31 = vld [vmem:[#allocation5 + $0x40] sm:$0xff]  ;;  %v233_v33 = vld [vmem:[#allocation5 + $0x30] sm:$0xff]  ;;  %v232_v34 = vld [vmem:[#allocation5 + $0x28] sm:$0xff] }
  0x27   :  { %390 = vmatpush3.msra.mxu1 %v146_v7  ;;  %420 = vmatprep.subr.mxu0 %v532_v0  ;;  %v231_v35 = vld [vmem:[#allocation5 + $0x20] sm:$0xff]  ;;  %v230_v36 = vld [vmem:[#allocation5 + $0x18] sm:$0xff]  ;;  %v229_v37 = vld [vmem:[#allocation5 + $0x10] sm:$0xff] }
  0x28   :  { %391 = vmatprep.subr.mxu1 %v532_v0  ;;  %421 = vmatpush3.msra.mxu0 %v240_v21  ;;  %v228_v38 = vld [vmem:[#allocation5 + $0x8] sm:$0xff]  ;;  %v227_v39 = vld [vmem:[#allocation5] sm:$0xff] }
  0x29   :  { %392 = vmatpush3.msra.mxu1 %v145_v8  ;;  %422 = vmatprep.subr.mxu0 %v532_v0  ;;  %v338_v40 = vld [vmem:[%s632_s4 + $0x1] ss:$0 sm:$0xff]  ;;  %v339_v45 = vld [vmem:[%s632_s4 + $0x2] ss:$0 sm:$0xff] }
  0x2a   :  { %393 = vmatprep.subr.mxu1 %v532_v0  ;;  %423 = vmatpush3.msra.mxu0 %v239_v22 }
  0x2b   :  { %394 = vmatpush3.msra.mxu1 %v144_v9  ;;  %424 = vmatprep.subr.mxu0 %v532_v0 }
  0x2c   :  { %395 = vmatprep.subr.mxu1 %v532_v0  ;;  %425 = vmatpush3.msra.mxu0 %v238_v23 }
  0x2d   :  { %396 = vmatpush3.msra.mxu1 %v143_v10  ;;  %426 = vmatprep.subr.mxu0 %v532_v0 }
  0x2e   :  { %397 = vmatprep.subr.mxu1 %v532_v0  ;;  %427 = vmatpush3.msra.mxu0 %v237_v24 }
  0x2f   :  { %398 = vmatpush3.msra.mxu1 %v142_v11  ;;  %428 = vmatprep.subr.mxu0 %v532_v0 }
  0x30   :  { %399 = vmatprep.subr.mxu1 %v532_v0  ;;  %429 = vmatpush3.msra.mxu0 %v236_v25 }
  0x31   :  { %400 = vmatpush3.msra.mxu1 %v141_v12  ;;  %430 = vmatprep.subr.mxu0 %v532_v0 }
  0x32   :  { %401 = vmatprep.subr.mxu1 %v532_v0  ;;  %431 = vmatpush3.msra.mxu0 %v235_v31 }
  0x33   :  { %402 = vmatpush3.msra.mxu1 %v140_v13  ;;  %432 = vmatprep.subr.mxu0 %v532_v0 }
  0x34   :  { %403 = vmatprep.subr.mxu1 %v532_v0  ;;  %433 = vmatpush3.msra.mxu0 %v234_v32 }
  0x35   :  { %404 = vmatpush3.msra.mxu1 %v139_v14  ;;  %434 = vmatprep.subr.mxu0 %v532_v0 }
  0x36   :  { %405 = vmatprep.subr.mxu1 %v532_v0  ;;  %435 = vmatpush3.msra.mxu0 %v233_v33 }
  0x37   :  { %406 = vmatpush3.msra.mxu1 %v138_v15  ;;  %436 = vmatprep.subr.mxu0 %v532_v0 }
  0x38   :  { %407 = vmatprep.subr.mxu1 %v532_v0  ;;  %437 = vmatpush3.msra.mxu0 %v232_v34 }
  0x39   :  { %408 = vmatpush3.msra.mxu1 %v137_v16  ;;  %438 = vmatprep.subr.mxu0 %v532_v0 }
  0x3a   :  { %409 = vmatprep.subr.mxu1 %v532_v0  ;;  %439 = vmatpush3.msra.mxu0 %v231_v35 }
  0x3b   :  { %410 = vmatpush3.msra.mxu1 %v136_v17  ;;  %440 = vmatprep.subr.mxu0 %v532_v0 }
  0x3c   :  { %411 = vmatprep.subr.mxu1 %v532_v0  ;;  %441 = vmatpush3.msra.mxu0 %v230_v36 }
  0x3d   :  { %412 = vmatpush3.msra.mxu1 %v135_v18  ;;  %442 = vmatprep.subr.mxu0 %v532_v0 }
  0x3e   :  { %443 = vmatpush3.msra.mxu0 %v229_v37 }
  0x3f   :  { %444 = vmatprep.subr.mxu0 %v532_v0 }
  0x40   :  { %445 = vmatpush3.msra.mxu0 %v228_v38 }
  0x41   :  { %446 = vmatprep.subr.mxu0 %v532_v0 }
  0x42   :  { %447 = vmatpush3.msra.mxu0 %v227_v39 }
  0xe0   :  { %v130_v27 = vpop.f32.mrf.mxu0 }
  0xe1   :  { %v131_v28 = vadd.f32 %v335_v26, %v130_v27 }
  0xe2   :  { %v380_v29 = vpop.f32.mrf.mxu0 }
  0xe3   :  { %458 = vtanh.f32 %v131_v28 }
  0xf0   :  { %v459_v30 = vpop.eup %458 }
  0xf1   :  { %414 = vmatmul.mubr.f32.vlgmr.msra.gmra.mxu1 %v459_v30 }
 0x1b1   :  { %v222_v41 = vpop.f32.mrf.mxu1 }
 0x1b2   :  { %v223_v42 = vadd.f32 %v338_v40, %v222_v41 }
 0x1b3   :  { %v415_v43 = vpop.f32.mrf.mxu1 }
 0x1b4   :  { %460 = vtanh.f32 %v223_v42 }
 0x1c1   :  { %v461_v44 = vpop.eup %460 }
 0x1c2   :  { %449 = vmatmul.mubr.f32.vlgmr.msra.gmra.mxu0 %v461_v44 }
 0x282   :  { %v314_v46 = vpop.f32.mrf.mxu0 }
 0x283   :  { %v315_v47 = vadd.f32 %v339_v45, %v314_v46 }
 0x284   :  { %v450_v48 = vpop.f32.mrf.mxu0 }
 0x285   :  { %318 = vst [vmem:[#allocation7] sm:$0xff] %v315_v47 }
 0x286   :  { %513 = shalt.err (!%p510_p0)
}
 0x287   :  { %328 = dma.vmem_to_hbm [thread:$0]  %s326_s12, 128, %s633_s5, [#allocation4]  }
 0x288   :  { %526 = dma.done.wait [#allocation4], 128  }
 0x289   :  { %527 = vsyncadd [#allocation4], 4294967168 }
 0x28a   :  { %332 = vsyncpa [#allocation3], 1 }
 0x28b   :  { %333 = vsyncpa [#allocation6], 1 }
 0x28c   :  { %334 = vsyncpa [#allocation4], 1 }

</bundles_post_ra>
